<compile_context>
chip_gen: v7x
topology: tpu7x:2x2x1
jax: 0.10.0
libtpu: 0.0.40
codegen_flags: <defaults>
</compile_context>

<pallas_src>
import functools

import jax
import jax.numpy as jnp
from jax.experimental import pallas as pl
from jax.experimental.pallas import tpu as pltpu


_LANE_CANDIDATES = (2048, 1024, 512, 256, 128)
_TARGET_BLOCK_BYTES = 4 * 1024 * 1024   # per-block tile; in+out double-buffered ~= 16 MiB
_SINGLE_BLOCK_BYTES = 512 * 1024        # below this, a single grid step is cheapest
_MIN_GRID_STEPS = 8                     # pipelining + even megacore split on v7x
_VMEM_LIMIT_BYTES = 32 << 20            # safe on v5e/v6e (128 MiB phys) and v7x (64 MiB)


def _sublane_multiple(itemsize: int) -> int:
    # Second-minor block dim must be a multiple of the packed sublane tile.
    return {4: 8, 2: 16, 1: 32}.get(itemsize, 8)


def _diff_binarize_kernel(x_ref, o_ref, *, threshold, k):
    # Native-dtype load, f32 math, native-dtype store.
    x = x_ref[...].astype(jnp.float32)
    x = jnp.clip(x, -1.0, 1.0)
    # 1/(1+exp(-k*(x-td)))*2 - 1  ==  tanh(0.5*k*(x - td))   (single EUP op)
    o_ref[...] = jnp.tanh((0.5 * k) * (x - threshold)).astype(o_ref.dtype)


def diff_binarization(x, threshold=0.0, k=50.0):
    """Differentiable binarization (elementwise). x: any-shape float array in [-1, 1]."""
    orig_shape = x.shape
    orig_dtype = x.dtype
    T = x.size
    itemsize = x.dtype.itemsize
    sub = _sublane_multiple(itemsize)

    flat = x.reshape(-1)  # contiguous reshape: free

    # Lane width: largest multiple of 128 that divides T -> no element padding.
    L = None
    if T % 128 == 0:
        for cand in _LANE_CANDIDATES:
            if T % cand == 0:
                L = cand
                break
    if L is None:
        # Rare ragged path: pad by < 128 elements to a full 128-lane row.
        L = 128
    R = pl.cdiv(T, L)

    total_pad = R * L - T
    if total_pad:
        # Pad is allowed to fuse into the kernel's input DMA (allow_input_fusion
        # below); the output prefix-slice at the end is the only extra copy on
        # this (rare) path.
        flat = jnp.pad(flat, (0, total_pad))
    x2d = flat.reshape(R, L)

    # Row blocking: ~constant bytes per block (scaled by dtype), at least
    # _MIN_GRID_STEPS grid steps once the tensor is big enough to pipeline.
    total_bytes = R * L * itemsize
    if total_bytes <= _SINGLE_BLOCK_BYTES:
        br = R
    else:
        max_br = max(sub, (_TARGET_BLOCK_BYTES // (L * itemsize)) // sub * sub)
        want_br = max(sub, ((pl.cdiv(R, _MIN_GRID_STEPS) + sub - 1) // sub) * sub)
        br = min(max_br, want_br)
    grid = (pl.cdiv(R, br),)   # non-dividing last row-block is masked by Pallas

    kernel = functools.partial(
        _diff_binarize_kernel, threshold=float(threshold), k=float(k)
    )

    out2d = pl.pallas_call(
        kernel,
        out_shape=jax.ShapeDtypeStruct((R, L), orig_dtype),
        grid=grid,
        in_specs=[pl.BlockSpec((br, L), lambda i: (i, 0))],
        out_specs=pl.BlockSpec((br, L), lambda i: (i, 0)),
        compiler_params=pltpu.CompilerParams(
            dimension_semantics=("parallel",),
            vmem_limit_bytes=_VMEM_LIMIT_BYTES,
            allow_input_fusion=[True] if total_pad else None,
        ),
        cost_estimate=pl.CostEstimate(
            flops=5 * T,
            transcendentals=T,
            bytes_accessed=2 * T * itemsize,
        ),
    )(x2d)

    out_flat = out2d.reshape(-1)
    if total_pad:
        out_flat = out_flat[:T]
    return out_flat.reshape(orig_shape)


def _reference(x, threshold=0.0, k=50.0):
    x = jnp.clip(x.astype(jnp.float32), -1.0, 1.0)
    return 1.0 / (1.0 + jnp.exp(-k * (x - threshold))) * 2.0 - 1.0


if __name__ == "__main__":
    key = jax.random.PRNGKey(0)
    k0, k1, k2 = jax.random.split(key, 3)

    # 1) NCHW layout like the PyTorch module, values around [-1, 1] (single block).
    x = jax.random.uniform(k0, (2, 4, 16, 16), jnp.float32, minval=-1.2, maxval=1.2)
    out = jax.block_until_ready(diff_binarization(x, threshold=0.0, k=50.0))
    ref = _reference(x, threshold=0.0, k=50.0)
    assert out.shape == x.shape and out.dtype == x.dtype
    assert jnp.allclose(out, ref, atol=1e-5, rtol=1e-5), "f32 mismatch vs reference"

    # 2) Larger image: multi-step grid; row count (100) not divisible by the row
    #    block (16) -> exercises Pallas boundary masking; zero element padding.
    x_big = jax.random.uniform(k1, (2, 4, 160, 160), jnp.float32, minval=-1.2, maxval=1.2)
    out_big = jax.block_until_ready(diff_binarization(x_big, threshold=-0.05, k=50.0))
    ref_big = _reference(x_big, threshold=-0.05, k=50.0)
    assert out_big.shape == x_big.shape and out_big.dtype == x_big.dtype
    assert jnp.allclose(out_big, ref_big, atol=1e-5, rtol=1e-5), "multi-block mismatch"

    # 3) Ragged element count (not a multiple of 128) + bf16 native-dtype I/O.
    x_odd = jax.random.uniform(k2, (2, 3, 17, 19), jnp.bfloat16, minval=-1.2, maxval=1.2)
    out_odd = jax.block_until_ready(diff_binarization(x_odd, threshold=0.1, k=50.0))
    ref_odd = _reference(x_odd, threshold=0.1, k=50.0).astype(jnp.bfloat16)
    assert out_odd.shape == x_odd.shape and out_odd.dtype == x_odd.dtype
    assert jnp.allclose(
        out_odd.astype(jnp.float32), ref_odd.astype(jnp.float32), atol=2e-2, rtol=2e-2
    ), "bf16 mismatch vs reference"

    print("KERNEL_OK")
</pallas_src>

<mosaic_0001>
module attributes {stable_mosaic.version = 11 : i64} {
  func.func @_diff_binarize_kernel(%arg0: i32, %arg1: memref<1x2048xf32, #tpu.memory_space<vmem>>, %arg2: memref<1x2048xf32, #tpu.memory_space<vmem>>) attributes {dimension_semantics = [#tpu.dimension_semantics<parallel>], iteration_bounds = array<i64: 1>, scalar_prefetch = 0 : i64, scratch_operands = 0 : i64, tpu.core_type = #tpu.core_type<tc>, window_params = [{transform_indices = @transform_0, window_bounds = array<i64: 1, 2048>}, {transform_indices = @transform_1, window_bounds = array<i64: 1, 2048>}]} {
    %c0 = arith.constant 0 : index
    %c0_0 = arith.constant 0 : index
    %0 = vector.load %arg1[%c0, %c0_0] : memref<1x2048xf32, #tpu.memory_space<vmem>>, vector<1x2048xf32>
    %cst = arith.constant -1.000000e+00 : f32
    %cst_1 = arith.constant 1.000000e+00 : f32
    %1 = vector.broadcast %cst : f32 to vector<1x2048xf32>
    %2 = arith.maximumf %1, %0 : vector<1x2048xf32>
    %3 = vector.broadcast %cst_1 : f32 to vector<1x2048xf32>
    %4 = arith.minimumf %3, %2 : vector<1x2048xf32>
    %cst_2 = arith.constant 0.000000e+00 : f32
    %5 = vector.broadcast %cst_2 : f32 to vector<1x2048xf32>
    %6 = arith.subf %4, %5 : vector<1x2048xf32>
    %cst_3 = arith.constant 2.500000e+01 : f32
    %7 = vector.broadcast %cst_3 : f32 to vector<1x2048xf32>
    %8 = arith.mulf %7, %6 : vector<1x2048xf32>
    %9 = math.tanh %8 : vector<1x2048xf32>
    %c0_4 = arith.constant 0 : index
    %c0_5 = arith.constant 0 : index
    %10 = vector.load %arg2[%c0_4, %c0_5] : memref<1x2048xf32, #tpu.memory_space<vmem>>, vector<1x2048xf32>
    tpu.vector_store %arg2[%c0_4, %c0_5], %9 {strides = array<i32>} : memref<1x2048xf32, #tpu.memory_space<vmem>>, vector<1x2048xf32>,
    return
  }
  func.func @transform_0(%arg0: i32) -> (i32, i32) {
    %c0_i32 = arith.constant 0 : i32
    %c0_i32_0 = arith.constant 0 : i32
    return %arg0, %c0_i32 : i32, i32
  }
  func.func @transform_1(%arg0: i32) -> (i32, i32) {
    %c0_i32 = arith.constant 0 : i32
    %c0_i32_0 = arith.constant 0 : i32
    return %arg0, %c0_i32 : i32, i32
  }
}

</mosaic_0001>

<bundles_post_ra>
// kernel: tpu_custom_call.1
= control target key start
LH: loop header
LB: loop body
LE: loop exit
PB: predicated region body
PF: predicated region fallthrough
CT: control target
= control target key end

     0   :  { %6 = vsyncpa [#allocation3], 0  ;;  %s140_s0 = inlined_call_operand.hbm [shape: f32[1,2048], index: 0, kind: input, shape index: {}]   ;;  %s141_s1 = inlined_call_operand.hbm [shape: f32[1,2048], index: 1, kind: output, shape index: {}]  }
   0x1   :  { %7 = vsyncpa [#allocation4], 0  ;;  %s104_s6 = smov [#allocation2]   ;;  %s56_s10 = scalar_lea.hbm %s140_s0, 256 }
   0x2   :  { %s14_s7 = sshll.u32 %s104_s6, 4  ;;  %p57_p0 = scmp.ne.s32.totalorder %s140_s0, %s56_s10  ;;  %s15_s7 = int_to_ptr.vmem [resolvable:$true] %s14_s7 }
   0x3   :  { %p60_p1 = scmp.lt.u32.totalorder %s56_s10, %s140_s0 }
   0x5   :  { %p62_p2 = pnand %p60_p1, %p57_p0 }
   0x7   :  { %65 = shalt.err (!%p62_p2)
}
   0x8   :  { %s66_s15 = scalar_lea.vmem %s15_s7, 256  ;;  %p71_p4 = scmp.lt.s32.totalorder %s15_s7, %s15_s7 }
   0x9   :  { %p67_p3 = scmp.ne.s32.totalorder %s15_s7, %s66_s15  ;;  %p72_p5 = scmp.lt.s32.totalorder %s66_s15, %s66_s15 }
   0xb   :  { %p73_p6 = por %p72_p5, %p71_p4 }
   0xd   :  { %p74_p7 = pnand %p73_p6, %p67_p3 }
   0xf   :  { %77 = shalt.err (!%p74_p7)
}
  0x10   :  { %17 = dma.hbm_to_vmem [thread:$0]  %s140_s0, 256, %s15_s7, [#allocation3]  }
  0x11   :  { %100 = dma.done.wait [#allocation3], 256  }
  0x12   :  { %101 = vsyncadd [#allocation3], 4294967040  ;;  %v21_v0 = vld [vmem:[#allocation2] sm:$0xff]  ;;  %v22_v1 = vld [vmem:[#allocation2 + $0x8] sm:$0xff]  ;;  %s105_s18 = smov [#allocation5]  }
  0x13   :  { %v48_v2 = vclamps-f32 %v21_v0, 1.0  ;;  %v49_v3 = vclamps-f32 %v22_v1, 1.0  ;;  %s39_s19 = sshll.u32 %s105_s18, 4  ;;  %s40_s19 = int_to_ptr.vmem [resolvable:$true] %s39_s19 }
  0x14   :  { %s78_s20 = scalar_lea.vmem %s40_s19, 256  ;;  %p83_p9 = scmp.lt.s32.totalorder %s40_s19, %s40_s19 }
  0x15   :  { %v27_v4 = vmul.f32 25.0, %v48_v2  ;;  %v28_v5 = vmul.f32 25.0, %v49_v3  ;;  %p79_p8 = scmp.ne.s32.totalorder %s40_s19, %s78_s20  ;;  %p84_p10 = scmp.lt.s32.totalorder %s78_s20, %s78_s20 }
  0x17   :  { %52 = vtanh.f32 %v27_v4  ;;  %p85_p11 = por %p84_p10, %p83_p9 }
  0x18   :  { %54 = vtanh.f32 %v28_v5 }
  0x19   :  { %p86_p12 = pnand %p85_p11, %p79_p8 }
  0x21   :  { %v53_v6 = vpop.eup %52 }
  0x22   :  { %v55_v7 = vpop.eup %54  ;;  %31 = vst [vmem:[#allocation5] sm:$0xff] %v53_v6 }
  0x23   :  { %32 = vst [vmem:[#allocation5 + $0x8] sm:$0xff] %v55_v7 }
  0x24   :  { %89 = shalt.err (!%p86_p12)
}
  0x25   :  { %s90_s22 = scalar_lea.hbm %s141_s1, 256 }
  0x26   :  { %p91_p13 = scmp.ne.s32.totalorder %s141_s1, %s90_s22  ;;  %p94_p0 = scmp.lt.u32.totalorder %s90_s22, %s141_s1 }
  0x28   :  { %p96_p1 = pnand %p94_p0, %p91_p13 }
  0x2a   :  { %99 = shalt.err (!%p96_p1)
}
  0x2b   :  { %42 = dma.vmem_to_hbm [thread:$0]  %s40_s19, 256, %s141_s1, [#allocation4]  }
  0x2c   :  { %102 = dma.done.wait [#allocation4], 256  }
  0x2d   :  { %103 = vsyncadd [#allocation4], 4294967040 }
  0x2e   :  { %46 = vsyncpa [#allocation3], 1 }
  0x2f   :  { %47 = vsyncpa [#allocation4], 1 }

</bundles_post_ra>
